<compile_context>
chip_gen: v5e
topology: v5e:2x2
jax: 0.10.0
libtpu: 0.0.40
codegen_flags: <defaults>
</compile_context>

<pallas_src>
import jax
import jax.numpy as jnp
from jax.experimental import pallas as pl
from jax.experimental.pallas import tpu as pltpu


def _attn_kernel(mem_ref, inp_ref, w1t_ref, w2t_ref, b2_ref, v_ref, out_ref, acc_ref):
    # mem_ref : (BT, LT, D)  chunk of the memory bank
    # inp_ref : (BT, D)      chunk of query vectors
    # w1t_ref : (D, H)       linear1 weight, pre-transposed in the wrapper
    # w2t_ref : (D, H)       linear2 weight, pre-transposed in the wrapper
    # b2_ref  : (1, H)       linear2 bias
    # v_ref   : (1, H)       v weight (row vector)
    # out_ref : (BT, D)      attended output chunk (resident across the L axis)
    # acc_ref : (BT, D) f32  VMEM accumulator for the weighted sum over L
    l_idx = pl.program_id(1)

    @pl.when(l_idx == 0)
    def _():
        acc_ref[...] = jnp.zeros_like(acc_ref)

    BT, LT, D = mem_ref.shape
    H = w1t_ref.shape[1]

    mem = mem_ref[...]                                        # (BT, LT, D)
    mem_f32 = mem.astype(jnp.float32)                         # VPU/XLU math in f32

    # wq = memory_bank @ W1^T  -> (BT, LT, H).  Flatten (BT, LT) into one big
    # MXU matmul only when LT is a sublane multiple (free relayout); otherwise
    # let Mosaic lower the batched contraction directly.
    if LT % 8 == 0:
        wq = jnp.dot(mem.reshape(BT * LT, D), w1t_ref[...],
                     preferred_element_type=jnp.float32).reshape(BT, LT, H)
    else:
        wq = jnp.einsum('bld,dh->blh', mem, w1t_ref[...],
                        preferred_element_type=jnp.float32)

    # uh = input @ W2^T + b2  -> (BT, H)
    uh = jnp.dot(inp_ref[...], w2t_ref[...],
                 preferred_element_type=jnp.float32) + b2_ref[...].astype(jnp.float32)

    # wquh = tanh(wq + uh)  (broadcast uh over L); tanh/sigmoid run on the EUP.
    wquh = jnp.tanh(wq + uh[:, None, :])                      # (BT, LT, H)

    # scores = sigmoid(wquh . v): VPU multiply + lane reduce (no N=1 matmul).
    scores = jax.nn.sigmoid(
        jnp.sum(wquh * v_ref[...].astype(jnp.float32), axis=-1))   # (BT, LT)

    # Weighted sum over this L chunk: VPU multiply + sublane reduce.
    # (Sigmoid gate, not softmax -> per-chunk accumulation is exact.)
    acc_ref[...] += jnp.sum(scores[:, :, None] * mem_f32, axis=1)  # (BT, D)

    @pl.when(l_idx == pl.num_programs(1) - 1)
    def _():
        out_ref[...] = acc_ref[...].astype(out_ref.dtype)


def _round_up(x, m):
    return ((x + m - 1) // m) * m


def _tpu_vmem_and_cores():
    """Generation-aware VMEM capacity (per TensorCore) and TC count per chip."""
    vmem_cap = 64 * 1024 * 1024          # conservative fallback (v7x per-TC)
    num_tc = 1
    try:
        info = pltpu.get_tpu_info()
        vmem_cap = int(getattr(info, "vmem_capacity_bytes", vmem_cap))
    except Exception:
        pass
    try:
        kind = jax.devices()[0].device_kind.lower()
        if "v7" in kind:
            num_tc = 2
    except Exception:
        pass
    return vmem_cap, num_tc


def _pick_tiles(B, L, D, H, itemsize, out_itemsize, budget, num_tc):
    """Choose (BT, LT) so the per-step VMEM footprint fits the budget.

    Footprint counts the double-buffered memory_bank / input / output blocks,
    the resident (grid-invariant) weight blocks, the f32 intermediates
    (wq + wquh: 2 * BT*LT*H * 4B, scores: BT*LT * 4B) and the accumulator.
    """
    per_bl = D * itemsize * 2 + 2 * H * 4 + 4                 # per (batch, L) element
    per_b = D * (itemsize + out_itemsize) * 2 + D * 4          # per batch row (I/O + acc)
    const = (2 * D * H + 2 * H) * itemsize * 2                 # weights / bias / v

    # L tile: full L unless even an 8-row batch chunk would blow the budget.
    lt = L
    if L > 8 and 8 * L * per_bl + 8 * per_b + const > budget:
        lt_fit = (budget - const - 8 * per_b) // max(8 * per_bl, 1)
        lt = max(8, (lt_fit // 8) * 8)
        lt = min(lt, max(8, (L // 8) * 8))

    # Batch tile: biggest sublane-aligned chunk that fits.
    denom = max(lt * per_bl + per_b, 1)
    bt_fit = (budget - const) // denom
    bt = max(8, (bt_fit // 8) * 8)
    bt = min(bt, _round_up(B, 8))

    # v7x (2 TCs / chip): keep an even number of >= 2 batch grid steps so both
    # cores get work.  Single-TC chips keep the largest tile (fewer steps).
    if num_tc >= 2 and _round_up(B, 8) > 8:
        steps = pl.cdiv(B, bt)
        if steps == 1:
            steps = 2
        elif steps % 2 == 1:
            steps += 1
        bt = max(8, _round_up(pl.cdiv(B, steps), 8))

    return bt, lt


def attention_sigmoid(memory_bank, inp, w1, w2, b2, v):
    B, L, D = memory_bank.shape
    H = w1.shape[0]
    assert inp.shape == (B, D)
    assert w1.shape == (H, D) and w2.shape == (H, D)

    # Layout plumbing in the wrapper (free): pre-transpose weights, 2-D bias/v.
    w1t = w1.T                       # (D, H)
    w2t = w2.T                       # (D, H)
    b2_2d = b2.reshape(1, H)
    v_2d = v.reshape(1, H)

    out_dtype = memory_bank.dtype
    itemsize = memory_bank.dtype.itemsize
    w_itemsize = w1.dtype.itemsize

    vmem_cap, num_tc = _tpu_vmem_and_cores()
    vmem_limit = max(32 * 1024 * 1024, (vmem_cap * 3) // 4)   # ~96MiB v5e/v6e, ~48MiB v7x
    budget = (vmem_limit * 3) // 5                            # headroom for compiler scratch

    bt, lt = _pick_tiles(B, L, D, H, itemsize, out_dtype.itemsize, budget, num_tc)
    grid_b = pl.cdiv(B, bt)
    grid_l = pl.cdiv(L, lt)
    B_pad = grid_b * bt
    L_pad = grid_l * lt

    # Wrapper-side zero padding instead of shrinking BT to a divisor of B:
    # padded memory rows are all-zero, so their contribution is exactly zero.
    mem_p = memory_bank
    inp_p = inp
    if B_pad != B or L_pad != L:
        mem_p = jnp.pad(memory_bank, ((0, B_pad - B), (0, L_pad - L), (0, 0)))
    if B_pad != B:
        inp_p = jnp.pad(inp, ((0, B_pad - B), (0, 0)))

    # Advisory cost: this kernel is HBM-bound on the memory_bank stream.
    bytes_accessed = (mem_p.size + inp_p.size + B_pad * D) * itemsize \
        + (2 * D * H + 2 * H) * w_itemsize
    flops = (2 * B_pad * L_pad * D * H        # wq
             + 2 * B_pad * D * H              # uh
             + 2 * B_pad * L_pad * H          # scores dot
             + 2 * B_pad * L_pad * D)         # weighted sum
    transcendentals = B_pad * L_pad * H + B_pad * L_pad

    out = pl.pallas_call(
        _attn_kernel,
        out_shape=jax.ShapeDtypeStruct((B_pad, D), out_dtype),
        grid=(grid_b, grid_l),
        in_specs=[
            pl.BlockSpec((bt, lt, D), lambda i, l: (i, l, 0)),   # memory_bank chunk
            pl.BlockSpec((bt, D),     lambda i, l: (i, 0)),      # input chunk
            pl.BlockSpec((D, H),      lambda i, l: (0, 0)),      # W1^T (grid-invariant)
            pl.BlockSpec((D, H),      lambda i, l: (0, 0)),      # W2^T (grid-invariant)
            pl.BlockSpec((1, H),      lambda i, l: (0, 0)),      # b2
            pl.BlockSpec((1, H),      lambda i, l: (0, 0)),      # v
        ],
        out_specs=pl.BlockSpec((bt, D), lambda i, l: (i, 0)),
        scratch_shapes=[pltpu.VMEM((bt, D), jnp.float32)],       # weighted-sum accumulator
        compiler_params=pltpu.CompilerParams(
            dimension_semantics=("parallel", "arbitrary"),
            vmem_limit_bytes=int(vmem_limit),
        ),
        cost_estimate=pl.CostEstimate(
            flops=int(flops),
            transcendentals=int(transcendentals),
            bytes_accessed=int(bytes_accessed),
        ),
    )(mem_p, inp_p, w1t, w2t, b2_2d, v_2d)

    return out[:B] if B_pad != B else out


def attention_sigmoid_ref(memory_bank, inp, w1, w2, b2, v):
    # Pure-JAX reference mirroring the PyTorch module exactly.
    wq = jnp.einsum("bld,hd->blh", memory_bank, w1)
    uh = (inp @ w2.T + b2)[:, None, :]
    wquh = jnp.tanh(wq + uh)
    scores = jax.nn.sigmoid(jnp.einsum("blh,h->bl", wquh, v.reshape(-1)))
    return jnp.sum(scores[..., None] * memory_bank, axis=1)


if __name__ == "__main__":
    # Small synthetic config: in_dim=32, mem_dim (hidden)=32, batch=16, seq len=8.
    B, L, in_dim, hidden = 16, 8, 32, 32

    key = jax.random.PRNGKey(0)
    k_mem, k_inp, k_w1, k_w2, k_b2, k_v = jax.random.split(key, 6)

    memory_bank = jax.random.normal(k_mem, (B, L, in_dim), dtype=jnp.float32)
    inp = jax.random.normal(k_inp, (B, in_dim), dtype=jnp.float32)

    # Deterministic parameter init (PyTorch nn.Linear weight layout: out x in).
    w1 = jax.random.normal(k_w1, (hidden, in_dim), dtype=jnp.float32) * 0.1
    w2 = jax.random.normal(k_w2, (hidden, in_dim), dtype=jnp.float32) * 0.1
    b2 = jax.random.normal(k_b2, (hidden,), dtype=jnp.float32) * 0.1
    v = jax.random.normal(k_v, (1, hidden), dtype=jnp.float32) * 0.1

    out = attention_sigmoid(memory_bank, inp, w1, w2, b2, v)
    out = jax.block_until_ready(out)

    ref = attention_sigmoid_ref(memory_bank, inp, w1, w2, b2, v)
    assert out.shape == (B, in_dim)
    assert jnp.allclose(out, ref, atol=1e-4, rtol=1e-4), "mismatch vs reference"

    print("KERNEL_OK")
</pallas_src>

<mosaic_0001>
module attributes {stable_mosaic.version = 11 : i64} {
  func.func @_attn_kernel(%arg0: i32, %arg1: i32, %arg2: memref<16x8x32xf32, #tpu.memory_space<vmem>>, %arg3: memref<16x32xf32, #tpu.memory_space<vmem>>, %arg4: memref<32x32xf32, #tpu.memory_space<vmem>>, %arg5: memref<32x32xf32, #tpu.memory_space<vmem>>, %arg6: memref<1x32xf32, #tpu.memory_space<vmem>>, %arg7: memref<1x32xf32, #tpu.memory_space<vmem>>, %arg8: memref<16x32xf32, #tpu.memory_space<vmem>>, %arg9: memref<16x32xf32, #tpu.memory_space<vmem>>) attributes {dimension_semantics = [#tpu.dimension_semantics<parallel>, #tpu.dimension_semantics<arbitrary>], iteration_bounds = array<i64: 1, 1>, scalar_prefetch = 0 : i64, scratch_operands = 1 : i64, tpu.core_type = #tpu.core_type<tc>, window_params = [{transform_indices = @transform_0, window_bounds = array<i64: 16, 8, 32>}, {transform_indices = @transform_1, window_bounds = array<i64: 16, 32>}, {pipeline_mode = #tpu.pipeline_mode<synchronous>, transform_indices = @transform_2, window_bounds = array<i64: 32, 32>}, {pipeline_mode = #tpu.pipeline_mode<synchronous>, transform_indices = @transform_3, window_bounds = array<i64: 32, 32>}, {pipeline_mode = #tpu.pipeline_mode<synchronous>, transform_indices = @transform_4, window_bounds = array<i64: 1, 32>}, {pipeline_mode = #tpu.pipeline_mode<synchronous>, transform_indices = @transform_5, window_bounds = array<i64: 1, 32>}, {transform_indices = @transform_6, window_bounds = array<i64: 16, 32>}]} {
    %c0_i32 = arith.constant 0 : i32
    %0 = arith.cmpi eq, %arg1, %c0_i32 : i32
    %1 = arith.extui %0 : i1 to i32
    %c0_i32_0 = arith.constant 0 : i32
    %2 = arith.cmpi ne, %1, %c0_i32_0 : i32
    scf.if %2 {
      %cst_23 = arith.constant 0.000000e+00 : f32
      %38 = vector.broadcast %cst_23 : f32 to vector<16x32xf32>
      %c0_24 = arith.constant 0 : index
      %c0_25 = arith.constant 0 : index
      %39 = vector.load %arg9[%c0_24, %c0_25] : memref<16x32xf32, #tpu.memory_space<vmem>>, vector<16x32xf32>
      tpu.vector_store %arg9[%c0_24, %c0_25], %38 {strides = array<i32>} : memref<16x32xf32, #tpu.memory_space<vmem>>, vector<16x32xf32>,
    } else {
    }
    %c0 = arith.constant 0 : index
    %c0_1 = arith.constant 0 : index
    %c0_2 = arith.constant 0 : index
    %3 = vector.load %arg2[%c0, %c0_1, %c0_2] : memref<16x8x32xf32, #tpu.memory_space<vmem>>, vector<16x8x32xf32>
    %4 = vector.shape_cast %3 : vector<16x8x32xf32> to vector<128x32xf32>
    %c0_3 = arith.constant 0 : index
    %c0_4 = arith.constant 0 : index
    %5 = vector.load %arg4[%c0_3, %c0_4] : memref<32x32xf32, #tpu.memory_space<vmem>>, vector<32x32xf32>
    %cst = arith.constant dense<0.000000e+00> : vector<128x32xf32>
    %6 = tpu.matmul %4, %5, %cst {dimension_numbers = #tpu.dot_dimension_numbers<[1], [0], [0], [1], [0, 0, 1, 1], [], []>} : vector<128x32xf32>, vector<32x32xf32>, vector<128x32xf32> -> vector<128x32xf32>
    %7 = vector.shape_cast %6 : vector<128x32xf32> to vector<16x8x32xf32>
    %c0_5 = arith.constant 0 : index
    %c0_6 = arith.constant 0 : index
    %8 = vector.load %arg3[%c0_5, %c0_6] : memref<16x32xf32, #tpu.memory_space<vmem>>, vector<16x32xf32>
    %c0_7 = arith.constant 0 : index
    %c0_8 = arith.constant 0 : index
    %9 = vector.load %arg5[%c0_7, %c0_8] : memref<32x32xf32, #tpu.memory_space<vmem>>, vector<32x32xf32>
    %cst_9 = arith.constant dense<0.000000e+00> : vector<16x32xf32>
    %10 = tpu.matmul %8, %9, %cst_9 {dimension_numbers = #tpu.dot_dimension_numbers<[1], [0], [0], [1], [0, 0, 1, 1], [], []>} : vector<16x32xf32>, vector<32x32xf32>, vector<16x32xf32> -> vector<16x32xf32>
    %c0_10 = arith.constant 0 : index
    %c0_11 = arith.constant 0 : index
    %11 = vector.load %arg6[%c0_10, %c0_11] : memref<1x32xf32, #tpu.memory_space<vmem>>, vector<1x32xf32>
    %12 = vector.broadcast %11 : vector<1x32xf32> to vector<16x32xf32>
    %13 = arith.addf %10, %12 : vector<16x32xf32>
    %14 = vector.shape_cast %13 : vector<16x32xf32> to vector<16x1x32xf32>
    %15 = vector.broadcast %14 : vector<16x1x32xf32> to vector<16x8x32xf32>
    %16 = arith.addf %7, %15 : vector<16x8x32xf32>
    %17 = math.tanh %16 : vector<16x8x32xf32>
    %c0_12 = arith.constant 0 : index
    %c0_13 = arith.constant 0 : index
    %18 = vector.load %arg7[%c0_12, %c0_13] : memref<1x32xf32, #tpu.memory_space<vmem>>, vector<1x32xf32>
    %19 = vector.shape_cast %18 : vector<1x32xf32> to vector<1x1x32xf32>
    %20 = vector.broadcast %19 : vector<1x1x32xf32> to vector<16x8x32xf32>
    %21 = arith.mulf %17, %20 : vector<16x8x32xf32>
    %cst_14 = arith.constant dense<0.000000e+00> : vector<16x8xf32>
    %22 = vector.multi_reduction <add>, %21, %cst_14 [2] : vector<16x8x32xf32> to vector<16x8xf32>
    %23 = arith.negf %22 : vector<16x8xf32>
    %24 = math.exp %23 : vector<16x8xf32>
    %cst_15 = arith.constant 1.000000e+00 : f32
    %25 = vector.broadcast %cst_15 : f32 to vector<16x8xf32>
    %26 = arith.addf %25, %24 : vector<16x8xf32>
    %27 = arith.divf %25, %26 : vector<16x8xf32>
    %c0_16 = arith.constant 0 : index
    %c0_17 = arith.constant 0 : index
    %28 = vector.load %arg9[%c0_16, %c0_17] : memref<16x32xf32, #tpu.memory_space<vmem>>, vector<16x32xf32>
    %29 = vector.shape_cast %27 : vector<16x8xf32> to vector<16x8x1xf32>
    %30 = vector.broadcast %29 : vector<16x8x1xf32> to vector<16x8x32xf32>
    %31 = arith.mulf %30, %3 : vector<16x8x32xf32>
    %cst_18 = arith.constant dense<0.000000e+00> : vector<16x32xf32>
    %32 = vector.multi_reduction <add>, %31, %cst_18 [1] : vector<16x8x32xf32> to vector<16x32xf32>
    %33 = arith.addf %28, %32 : vector<16x32xf32>
    %c0_19 = arith.constant 0 : index
    %c0_20 = arith.constant 0 : index
    %34 = vector.load %arg9[%c0_19, %c0_20] : memref<16x32xf32, #tpu.memory_space<vmem>>, vector<16x32xf32>
    tpu.vector_store %arg9[%c0_19, %c0_20], %33 {strides = array<i32>} : memref<16x32xf32, #tpu.memory_space<vmem>>, vector<16x32xf32>,
    %c0_i32_21 = arith.constant 0 : i32
    %35 = arith.cmpi eq, %arg1, %c0_i32_21 : i32
    %36 = arith.extui %35 : i1 to i32
    %c0_i32_22 = arith.constant 0 : i32
    %37 = arith.cmpi ne, %36, %c0_i32_22 : i32
    scf.if %37 {
      %c0_23 = arith.constant 0 : index
      %c0_24 = arith.constant 0 : index
      %38 = vector.load %arg9[%c0_23, %c0_24] : memref<16x32xf32, #tpu.memory_space<vmem>>, vector<16x32xf32>
      %c0_25 = arith.constant 0 : index
      %c0_26 = arith.constant 0 : index
      %39 = vector.load %arg8[%c0_25, %c0_26] : memref<16x32xf32, #tpu.memory_space<vmem>>, vector<16x32xf32>
      tpu.vector_store %arg8[%c0_25, %c0_26], %38 {strides = array<i32>} : memref<16x32xf32, #tpu.memory_space<vmem>>, vector<16x32xf32>,
    } else {
    }
    return
  }
  func.func @transform_0(%arg0: i32, %arg1: i32) -> (i32, i32, i32) {
    %c0_i32 = arith.constant 0 : i32
    %c0_i32_0 = arith.constant 0 : i32
    return %arg0, %arg1, %c0_i32 : i32, i32, i32
  }
  func.func @transform_1(%arg0: i32, %arg1: i32) -> (i32, i32) {
    %c0_i32 = arith.constant 0 : i32
    %c0_i32_0 = arith.constant 0 : i32
    return %arg0, %c0_i32 : i32, i32
  }
  func.func @transform_2(%arg0: i32, %arg1: i32) -> (i32, i32) {
    %c0_i32 = arith.constant 0 : i32
    %c0_i32_0 = arith.constant 0 : i32
    %c0_i32_1 = arith.constant 0 : i32
    return %c0_i32, %c0_i32_0 : i32, i32
  }
  func.func @transform_3(%arg0: i32, %arg1: i32) -> (i32, i32) {
    %c0_i32 = arith.constant 0 : i32
    %c0_i32_0 = arith.constant 0 : i32
    %c0_i32_1 = arith.constant 0 : i32
    return %c0_i32, %c0_i32_0 : i32, i32
  }
  func.func @transform_4(%arg0: i32, %arg1: i32) -> (i32, i32) {
    %c0_i32 = arith.constant 0 : i32
    %c0_i32_0 = arith.constant 0 : i32
    %c0_i32_1 = arith.constant 0 : i32
    return %c0_i32, %c0_i32_0 : i32, i32
  }
  func.func @transform_5(%arg0: i32, %arg1: i32) -> (i32, i32) {
    %c0_i32 = arith.constant 0 : i32
    %c0_i32_0 = arith.constant 0 : i32
    %c0_i32_1 = arith.constant 0 : i32
    return %c0_i32, %c0_i32_0 : i32, i32
  }
  func.func @transform_6(%arg0: i32, %arg1: i32) -> (i32, i32) {
    %c0_i32 = arith.constant 0 : i32
    %c0_i32_0 = arith.constant 0 : i32
    return %arg0, %c0_i32 : i32, i32
  }
}

</mosaic_0001>

<bundles_post_ra>
// kernel: tpu_custom_call.1
= control target key start
LH: loop header
LB: loop body
LE: loop exit
PB: predicated region body
PF: predicated region fallthrough
CT: control target
= control target key end

     0   :  { %11 = vsyncpa [#allocation4], 0  ;;  %s1715_s0 = inlined_call_operand.hbm [shape: f32[16,8,32], index: 0, kind: input, shape index: {}]   ;;  %s1716_s1 = inlined_call_operand.hbm [shape: f32[16,32], index: 1, kind: input, shape index: {}]   ;;  %s1717_s2 = inlined_call_operand.hbm [shape: f32[32,32], index: 2, kind: input, shape index: {}]   ;;  %s1718_s3 = inlined_call_operand.hbm [shape: f32[32,32], index: 3, kind: input, shape index: {}]   ;;  %s1719_s4 = inlined_call_operand.vmem [shape: f32[1,32], index: 4, kind: input, shape index: {}]   ;;  %s1720_s5 = inlined_call_operand.vmem [shape: f32[1,32], index: 5, kind: input, shape index: {}]   ;;  %s1721_s6 = inlined_call_operand.hbm [shape: f32[16,32], index: 6, kind: output, shape index: {}]  }
   0x1   :  { %12 = vsyncpa [#allocation7], 0 }
   0x2   :  { %13 = vsyncpa [#allocation10], 0 }
   0x3   :  { %14 = vsyncpa [#allocation5], 0  ;;  %s32_s23 = sshll.u32 %s1716_s1, 4  ;;  %s1205_s24 = smov [#allocation6]   ;;  %s33_s23 = int_to_ptr.hbm [resolvable:$true] %s32_s23 }
   0x4   :  { %s34_s25 = sshll.u32 %s1205_s24, 4  ;;  %s19_s28 = sshll.u32 %s1715_s0, 4  ;;  %s35_s25 = int_to_ptr.vmem [resolvable:$true] %s34_s25  ;;  %s20_s28 = int_to_ptr.hbm [resolvable:$true] %s19_s28 }
   0x5   :  { %s1206_s29 = smov 128   ;;  %s1207_s30 = smov 8  }
   0x6   :  { %40 = dma.hbm_to_vmem [thread:$0]  %s33_s23, 256, %s35_s25, [#allocation7], %s1206_s29, %s1206_s29, %s1207_s30  }
   0x7   :  { %s1208_s7 = smov [#allocation3]   ;;  %s45_s1 = sshll.u32 %s1717_s2, 4  ;;  %s46_s1 = int_to_ptr.hbm [resolvable:$true] %s45_s1 }
   0x8   :  { %s21_s8 = sshll.u32 %s1208_s7, 4  ;;  %s58_s12 = sshll.u32 %s1718_s3, 4  ;;  %s22_s8 = int_to_ptr.vmem [resolvable:$true] %s21_s8  ;;  %s59_s12 = int_to_ptr.hbm [resolvable:$true] %s58_s12 }
   0x9   :  { %27 = dma.hbm_to_vmem [thread:$0]  %s20_s28, 2048, %s22_s8, [#allocation4], %s1206_s29, %s1206_s29, %s1207_s30  }
   0xa   :  { %s1209_s13 = smov [#allocation8]   ;;  %s1210_s15 = smov [#allocation9]  }
   0xb   :  { %s47_s14 = sshll.u32 %s1209_s13, 4  ;;  %s60_s2 = sshll.u32 %s1210_s15, 4  ;;  %s48_s14 = int_to_ptr.vmem [resolvable:$true] %s47_s14  ;;  %s61_s2 = int_to_ptr.vmem [resolvable:$true] %s60_s2 }
   0xc   :  { %53 = dma.hbm_to_vmem [thread:$0]  %s46_s1, 512, %s48_s14, [#allocation7], %s1206_s29, %s1206_s29, %s1207_s30  }
   0xd   :  { %66 = dma.hbm_to_vmem [thread:$0]  %s59_s12, 512, %s61_s2, [#allocation10], %s1206_s29, %s1206_s29, %s1207_s30  }
   0xe   :  { %1197 = dma.done.wait [#allocation4], 2048  }
   0xf   :  { %1198 = vsyncadd [#allocation4], 4294965248 }
  0x10   :  { %1199 = dma.done.wait [#allocation7], 768  }
  0x11   :  { %1200 = vsyncadd [#allocation7], 4294966528 }
  0x12   :  { %1201 = dma.done.wait [#allocation10], 512  }
  0x13   :  { %1202 = vsyncadd [#allocation10], 4294966784  ;;  %v113_v0 = vld [vmem:[#allocation8 + $0x18] sm:$0xff]  ;;  %v112_v1 = vld [vmem:[#allocation8 + $0x10] sm:$0xff]  ;;  %vm91_vm0 = vcmask 261120   ;;  %s905_s21 = sshll.u32 %s1721_s6, 4  ;;  %s906_s21 = int_to_ptr.hbm [resolvable:$true] %s905_s21 }
  0x14   :  { %175 = vmatpush.msra.mxu0 %v113_v0  ;;  %954 = vmatpush.msra.mxu1 %v113_v0  ;;  %v111_v2 = vld [vmem:[#allocation8 + $0x8] sm:$0xff]  ;;  %v110_v3 = vld [vmem:[#allocation8] sm:$0xff]  ;;  %v1272_v4 = vld [vmem:[#allocation3] sm:$0xff] }
  0x15   :  { %955 = vmatpush.msra.mxu2 %v113_v0  ;;  %956 = vmatpush.msra.mxu3 %v113_v0  ;;  %v1274_v5 = vld [vmem:[#allocation3 + $0x28] sm:$0xff]  ;;  %v1276_v6 = vld [vmem:[#allocation3 + $0x30] sm:$0xff]  ;;  %v105_v7 = vld [vmem:[#allocation3 + $0x58] sm:$0xff] }
  0x16   :  { %176 = vmatpush.msra.mxu0 %v112_v1  ;;  %957 = vmatpush.msra.mxu1 %v112_v1  ;;  %v233_v8 = vld [vmem:[#allocation9 + $0x18] sm:$0xff]  ;;  %v232_v9 = vld [vmem:[#allocation9 + $0x10] sm:$0xff]  ;;  %v231_v10 = vld [vmem:[#allocation9 + $0x8] sm:$0xff] }
  0x17   :  { %958 = vmatpush.msra.mxu2 %v112_v1  ;;  %959 = vmatpush.msra.mxu3 %v112_v1  ;;  %v230_v11 = vld [vmem:[#allocation9] sm:$0xff]  ;;  %v1285_v12 = vld [vmem:[#allocation3 + $0x8] sm:$0xff]  ;;  %v101_v13 = vld [vmem:[#allocation3 + $0x38] sm:$0xff] }
  0x18   :  { %177 = vmatpush.msra.mxu0 %v111_v2  ;;  %960 = vmatpush.msra.mxu1 %v111_v2  ;;  %v106_v14 = vld [vmem:[#allocation3 + $0x60] sm:$0xff]  ;;  %v1292_v16 = vld [vmem:[#allocation3 + $0x10] sm:$0xff]  ;;  %v1296_v18 = vld [vmem:[#allocation3 + $0x68] sm:$0xff] }
  0x19   :  { %961 = vmatpush.msra.mxu2 %v111_v2  ;;  %962 = vmatpush.msra.mxu3 %v111_v2  ;;  %v228_v15 = vld [vmem:[#allocation6] sm:$0xff]  ;;  %v229_v19 = vld [vmem:[#allocation6 + $0x8] sm:$0xff]  ;;  %v1305_v20 = vld [vmem:[#allocation3 + $0x18] sm:$0xff] }
  0x1a   :  { %178 = vmatpush.msra.mxu0 %v110_v3  ;;  %963 = vmatpush.msra.mxu1 %v110_v3  ;;  %v1294_v17 = vld [vmem:[#allocation3 + $0x40] sm:$0xff]  ;;  %v1307_v21 = vld [vmem:[#allocation3 + $0x48] sm:$0xff]  ;;  %v108_v22 = vld [vmem:[#allocation3 + $0x70] sm:$0xff] }
  0x1b   :  { %964 = vmatpush.msra.mxu2 %v110_v3  ;;  %965 = vmatpush.msra.mxu3 %v110_v3  ;;  %v1314_v23 = vld [vmem:[#allocation3 + $0x20] sm:$0xff]  ;;  %v1316_v24 = vld [vmem:[#allocation3 + $0x50] sm:$0xff]  ;;  %v109_v25 = vld [vmem:[#allocation3 + $0x78] sm:$0xff] }
  0x1c   :  { %920 = vmatmul.msk.f32.vlgmr.msra.gmra.mxu0 %vm91_vm0, %v1272_v4  ;;  %925 = vmatmul.msk.f32.vlgmr.msra.gmra.mxu1 %vm91_vm0, %v1274_v5  ;;  %v974_v30 = vld [vmem:[%s1719_s4] ss:$0 sm:$0xff] }
  0x1d   :  { %926 = vmatmul.msk.f32.vlgmr.msra.gmra.mxu2 %vm91_vm0, %v1276_v6  ;;  %931 = vmatmul.msk.f32.vlgmr.msra.gmra.mxu3 %vm91_vm0, %v105_v7  ;;  %v1340_v51 = vld [vmem:[%s1720_s5] ss:$0 sm:$0xff]  ;;  %s1212_s5 = smov [#allocation11]  }
  0x1e   :  { %256 = vmatpush.msrb.mxu1 %v233_v8  ;;  %s903_s18 = sshll.u32 %s1212_s5, 4  ;;  %s904_s18 = int_to_ptr.vmem [resolvable:$true] %s903_s18 }
  0x20   :  { %257 = vmatpush.msrb.mxu1 %v232_v9 }
  0x22   :  { %258 = vmatpush.msrb.mxu1 %v231_v10 }
  0x24   :  { %259 = vmatpush.msrb.mxu1 %v230_v11  ;;  %921 = vmatmul.msk.f32.gmra.mxu0 %vm91_vm0, %v1285_v12 }
  0x25   :  { %927 = vmatmul.msk.f32.gmra.mxu2 %vm91_vm0, %v101_v13  ;;  %932 = vmatmul.msk.f32.gmra.mxu3 %vm91_vm0, %v106_v14 }
  0x26   :  { %936 = vmatmul.msk.f32.vlgmr.msrb.gmra.mxu1 %vm91_vm0, %v228_v15 }
  0x2c   :  { %922 = vmatmul.msk.f32.gmra.mxu0 %vm91_vm0, %v1292_v16 }
  0x2d   :  { %928 = vmatmul.msk.f32.gmra.mxu2 %vm91_vm0, %v1294_v17  ;;  %933 = vmatmul.msk.f32.gmra.mxu3 %vm91_vm0, %v1296_v18 }
  0x2e   :  { %937 = vmatmul.msk.f32.gmra.mxu1 %vm91_vm0, %v229_v19 }
  0x34   :  { %923 = vmatmul.msk.f32.gmra.mxu0 %vm91_vm0, %v1305_v20 }
  0x35   :  { %929 = vmatmul.msk.f32.gmra.mxu2 %vm91_vm0, %v1307_v21  ;;  %934 = vmatmul.msk.f32.gmra.mxu3 %vm91_vm0, %v108_v22 }
  0x3c   :  { %924 = vmatmul.msk.f32.gmra.mxu0 %vm91_vm0, %v1314_v23 }
  0x3d   :  { %930 = vmatmul.msk.f32.gmra.mxu2 %vm91_vm0, %v1316_v24  ;;  %935 = vmatmul.msk.f32.gmra.mxu3 %vm91_vm0, %v109_v25 }
  0x99   :  { %v180_v26 = vpop.f32.mrf.mxu0  ;;  %v195_v27 = vpop.f32.mrf.mxu1 }
  0xa0   :  { %v198_v28 = vpop.f32.mrf.mxu2  ;;  %v213_v29 = vpop.f32.mrf.mxu3 }
  0xa1   :  { %v183_v31 = vpop.f32.mrf.mxu0 }
  0xa3   :  { %v261_v32 = vpop.f32.mrf.mxu1 }
  0xa4   :  { %v1326_v33 = vadd.f32 %v974_v30, %v261_v32 }
  0xa6   :  { %v270_v34 = vrot.slane %v1326_v33, 2  ;;  %v283_v35 = vperm.slane %v1326_v33, 0  ;;  %v273_v36 = vrot.slane %v1326_v33, 5  ;;  %v269_v37 = vrot.slane %v1326_v33, 1 }
  0xa7   :  { %v274_v46 = vrot.slane %v1326_v33, 6  ;;  %v272_v10 = vrot.slane %v1326_v33, 4 }
  0xa8   :  { %v1332_v38 = vpop.f32.mrf.mxu2  ;;  %v216_v39 = vpop.f32.mrf.mxu3  ;;  %v285_v40 = vperm.slane %v270_v34, 0  ;;  %v315_v41 = vadd.f32 %v283_v35, %v180_v26  ;;  %v288_v43 = vperm.slane %v273_v36, 0  ;;  %v284_v44 = vperm.slane %v269_v37, 0 }
  0xa9   :  { %v186_v42 = vpop.f32.mrf.mxu0  ;;  %v289_v54 = vperm.slane %v274_v46, 0 }
  0xaa   :  { %v317_v45 = vadd.f32 %v285_v40, %v186_v42  ;;  %976 = vtanh.f32 %v315_v41  ;;  %v320_v48 = vadd.f32 %v288_v43, %v195_v27  ;;  %v316_v49 = vadd.f32 %v284_v44, %v183_v31 }
  0xab   :  { %v264_v47 = vpop.f32.mrf.mxu1  ;;  %v321_v0 = vadd.f32 %v289_v54, %v198_v28  ;;  %v287_v28 = vperm.slane %v272_v10, 0  ;;  %v271_v42 = vrot.slane %v1326_v33, 3  ;;  %v275_v44 = vrot.slane %v1326_v33, 7 }
  0xac   :  { %v1335_v50 = vadd.f32 %v974_v30, %v264_v47  ;;  %978 = vtanh.f32 %v317_v45 }
  0xad   :  { %980 = vtanh.f32 %v320_v48 }
  0xae   :  { %v291_v52 = vperm.slane %v1335_v50, 0  ;;  %v280_v53 = vrot.slane %v1335_v50, 5  ;;  %982 = vtanh.f32 %v316_v49  ;;  %v278_v58 = vrot.slane %v1335_v50, 3 }
  0xaf   :  { %v279_v7 = vrot.slane %v1335_v50, 4  ;;  %v276_v27 = vrot.slane %v1335_v50, 1  ;;  %v277_v40 = vrot.slane %v1335_v50, 2  ;;  %v281_v54 = vrot.slane %v1335_v50, 6 }
  0xb0   :  { %v977_v55 = vpop.eup %976  ;;  %v204_v56 = vpop.f32.mrf.mxu2  ;;  %v296_v57 = vperm.slane %v280_v53, 0  ;;  %v294_v1 = vperm.slane %v278_v58, 0  ;;  %v286_v53 = vperm.slane %v271_v42, 0 }
  0xb1   :  { %v323_v59 = vadd.f32 %v291_v52, %v204_v56  ;;  %v219_v60 = vpop.f32.mrf.mxu3  ;;  %v189_v61 = vpop.f32.mrf.mxu0  ;;  %v351_v62 = vmul.f32 %v977_v55, %v1340_v51  ;;  %v295_v19 = vperm.slane %v279_v7, 0  ;;  %v292_v43 = vperm.slane %v276_v27, 0 }
  0xb2   :  { %v328_v63 = vadd.f32 %v296_v57, %v219_v60  ;;  %v979_v2 = vpop.eup %978  ;;  %v326_v15 = vadd.f32 %v294_v1, %v213_v29  ;;  %v293_v48 = vperm.slane %v277_v40, 0  ;;  %v290_v56 = vperm.slane %v275_v44, 0 }
  0xb3   :  { %984 = vtanh.f32 %v323_v59  ;;  %v367_v3 = vsel %vm91_vm0, %v351_v62, 0.0  ;;  %v981_v8 = vpop.eup %980  ;;  %v353_v9 = vmul.f32 %v979_v2, %v1340_v51  ;;  %v327_v36 = vadd.f32 %v295_v19, %v216_v39 }
  0xb4   :  { %986 = vtanh.f32 %v328_v63  ;;  %368 = vadd.xlane.f32.xlu0 %v367_v3  ;;  %v983_v11 = vpop.eup %982  ;;  %v356_v13 = vmul.f32 %v981_v8, %v1340_v51  ;;  %v318_v57 = vadd.f32 %v286_v53, %v189_v61  ;;  %v297_v63 = vperm.slane %v281_v54, 0 }
  0xb5   :  { %v373_v14 = vsel %vm91_vm0, %v353_v9, 0.0  ;;  %988 = vtanh.f32 %v321_v0  ;;  %v352_v25 = vmul.f32 %v983_v11, %v1340_v51  ;;  %v282_v0 = vrot.slane %v1335_v50, 7 }
  0xb6   :  { %v382_v22 = vsel %vm91_vm0, %v356_v13, 0.0  ;;  %374 = vadd.xlane.f32.xlu2 %v373_v14  ;;  %990 = vtanh.f32 %v326_v15  ;;  %v322_v2 = vadd.f32 %v290_v56, %v1332_v38 }
  0xb7   :  { %383 = vadd.xlane.f32.xlu1 %v382_v22  ;;  %v370_v29 = vsel %vm91_vm0, %v352_v25, 0.0  ;;  %v298_v11 = vperm.slane %v282_v0, 0 }
  0xb8   :  { %v207_v26 = vpop.f32.mrf.mxu2 }
  0xb9   :  { %v985_v30 = vpop.eup %984  ;;  %v192_v31 = vpop.f32.mrf.mxu0  ;;  %v324_v39 = vadd.f32 %v292_v43, %v207_v26 }
  0xba   :  { %v987_v32 = vpop.eup %986  ;;  %v319_v34 = vadd.f32 %v287_v28, %v192_v31  ;;  %v359_v35 = vmul.f32 %v985_v30, %v1340_v51  ;;  %v222_v45 = vpop.f32.mrf.mxu3 }
  0xbb   :  { %v364_v37 = vmul.f32 %v987_v32, %v1340_v51  ;;  %v989_v41 = vpop.eup %988  ;;  %v329_v3 = vadd.f32 %v297_v63, %v222_v45 }
  0xbc   :  { %371 = vadd.xlane.f32.xlu0 %v370_v29  ;;  %992 = vtanh.f32 %v319_v34  ;;  %v391_v46 = vsel %vm91_vm0, %v359_v35, 0.0  ;;  %v357_v49 = vmul.f32 %v989_v41, %v1340_v51  ;;  %v991_v52 = vpop.eup %990 }
  0xbd   :  { %v406_v47 = vsel %vm91_vm0, %v364_v37, 0.0  ;;  %994 = vtanh.f32 %v327_v36  ;;  %v362_v60 = vmul.f32 %v991_v52, %v1340_v51 }
  0xbe   :  { %407 = vadd.xlane.f32.xlu2 %v406_v47  ;;  %996 = vtanh.f32 %v324_v39  ;;  %v385_v59 = vsel %vm91_vm0, %v357_v49, 0.0 }
  0xbf   :  { %392 = vadd.xlane.f32.xlu1 %v391_v46  ;;  %v400_v8 = vsel %vm91_vm0, %v362_v60, 0.0 }
  0xc0   :  { %v210_v55 = vpop.f32.mrf.mxu2 }
  0xc1   :  { %v325_v33 = vadd.f32 %v293_v48, %v210_v55 }
  0xc2   :  { %v993_v58 = vpop.eup %992  ;;  %v225_v7 = vpop.f32.mrf.mxu3 }
  0xc3   :  { %998 = vtanh.f32 %v325_v33  ;;  %v995_v62 = vpop.eup %994  ;;  %v355_v1 = vmul.f32 %v993_v58, %v1340_v51  ;;  %v330_v50 = vadd.f32 %v298_v11, %v225_v7 }
  0xc4   :  { %386 = vadd.xlane.f32.xlu0 %v385_v59  ;;  %1000 = vtanh.f32 %v318_v57  ;;  %v363_v9 = vmul.f32 %v995_v62, %v1340_v51  ;;  %v997_v10 = vpop.eup %996 }
  0xc5   :  { %v379_v61 = vsel %vm91_vm0, %v355_v1, 0.0  ;;  %1002 = vtanh.f32 %v322_v2  ;;  %v360_v15 = vmul.f32 %v997_v10, %v1340_v51 }
  0xc6   :  { %380 = vadd.xlane.f32.xlu2 %v379_v61  ;;  %1004 = vtanh.f32 %v329_v3  ;;  %v403_v38 = vsel %vm91_vm0, %v363_v9, 0.0 }
  0xc7   :  { %401 = vadd.xlane.f32.xlu1 %v400_v8  ;;  %1006 = vtanh.f32 %v330_v50  ;;  %v394_v26 = vsel %vm91_vm0, %v360_v15, 0.0 }
  0xc9   :  { %v999_v13 = vpop.eup %998 }
  0xca   :  { %v361_v14 = vmul.f32 %v999_v13, %v1340_v51  ;;  %v1001_v19 = vpop.eup %1000 }
  0xcb   :  { %v1003_v25 = vpop.eup %1002  ;;  %v354_v27 = vmul.f32 %v1001_v19, %v1340_v51 }
  0xcc   :  { %404 = vadd.xlane.f32.xlu0 %v403_v38  ;;  %v397_v22 = vsel %vm91_vm0, %v361_v14, 0.0  ;;  %v1005_v28 = vpop.eup %1004  ;;  %v358_v30 = vmul.f32 %v1003_v25, %v1340_v51 }
  0xcd   :  { %v376_v31 = vsel %vm91_vm0, %v354_v27, 0.0  ;;  %v365_v32 = vmul.f32 %v1005_v28, %v1340_v51  ;;  %v1007_v34 = vpop.eup %1006 }
  0xce   :  { %398 = vadd.xlane.f32.xlu2 %v397_v22  ;;  %v388_v35 = vsel %vm91_vm0, %v358_v30, 0.0  ;;  %v366_v29 = vmul.f32 %v1007_v34, %v1340_v51 }
  0xcf   :  { %395 = vadd.xlane.f32.xlu1 %v394_v26  ;;  %v409_v36 = vsel %vm91_vm0, %v365_v32, 0.0 }
  0xd0   :  { %v412_v37 = vsel %vm91_vm0, %v366_v29, 0.0 }
  0xd4   :  { %377 = vadd.xlane.f32.xlu0 %v376_v31 }
  0xd6   :  { %389 = vadd.xlane.f32.xlu2 %v388_v35 }
  0xd7   :  { %410 = vadd.xlane.f32.xlu1 %v409_v36 }
  0xdc   :  { %413 = vadd.xlane.f32.xlu0 %v412_v37 }
 0x127   :  { %v369_v40 = vpop.xlane.xlu0 %368 }
 0x128   :  { %v938_v41 = vmul.f32 -1.442695, %v369_v40 }
 0x129   :  { %v375_v42 = vpop.xlane.xlu2 %374 }
 0x12a   :  { %1008 = vpow2.f32 %v938_v41  ;;  %v384_v43 = vpop.xlane.xlu1 %383  ;;  %v940_v44 = vmul.f32 -1.442695, %v375_v42 }
 0x12b   :  { %v943_v45 = vmul.f32 -1.442695, %v384_v43 }
 0x12c   :  { %1010 = vpow2.f32 %v940_v44 }
 0x12d   :  { %1012 = vpow2.f32 %v943_v45 }
 0x12f   :  { %v372_v46 = vpop.xlane.xlu0 %371 }
 0x130   :  { %v1009_v47 = vpop.eup %1008  ;;  %v939_v39 = vmul.f32 -1.442695, %v372_v46 }
 0x131   :  { %v463_v48 = vadd.f32 1.0, %v1009_v47  ;;  %v408_v49 = vpop.xlane.xlu2 %407 }
 0x132   :  { %1014 = vpow2.f32 %v939_v39  ;;  %v1011_v51 = vpop.eup %1010  ;;  %v393_v52 = vpop.xlane.xlu1 %392  ;;  %v951_v33 = vmul.f32 -1.442695, %v408_v49 }
 0x133   :  { %1016 = vrcp.f32 %v463_v48  ;;  %v1013_v53 = vpop.eup %1012  ;;  %v465_v54 = vadd.f32 1.0, %v1011_v51  ;;  %v946_v55 = vmul.f32 -1.442695, %v393_v52  ;;  %v488_v63 = vand.u32 2147483647, %v463_v48 }
 0x134   :  { %v1386_v56 = vadd.f32 1.0, %v1013_v53  ;;  %v490_v61 = vand.u32 2147483648, %v463_v48  ;;  %vm484_vm1 = vweird.f32 %v463_v48 }
 0x135   :  { %1018 = vrcp.f32 %v465_v54  ;;  %vm1399_vm3 = vcmp.eq.f32.partialorder %v488_v63, 8.507059e+37  ;;  %v518_v27 = vand.u32 2147483647, %v465_v54  ;;  %vm514_vm5 = vweird.f32 %v465_v54 }
 0x136   :  { %1020 = vrcp.f32 %v1386_v56  ;;  %v491_v25 = vor.u32 1.1754944e-38, %v490_v61  ;;  %v520_v31 = vand.u32 2147483648, %v465_v54  ;;  %v563_v35 = vand.u32 2147483647, %v1386_v56 }
 0x137   :  { %1022 = vpow2.f32 %v946_v55  ;;  %v387_v60 = vpop.xlane.xlu0 %386  ;;  %vm559_vm8 = vweird.f32 %v1386_v56  ;;  %v565_v40 = vand.u32 2147483648, %v1386_v56  ;;  %vm1426_vm9 = vcmp.eq.f32.partialorder %v518_v27, 8.507059e+37 }
 0x138   :  { %v1015_v57 = vpop.eup %1014  ;;  %1024 = vpow2.f32 %v951_v33  ;;  %v944_v2 = vmul.f32 -1.442695, %v387_v60  ;;  %v521_v47 = vor.u32 1.1754944e-38, %v520_v31  ;;  %vm1444_vm13 = vcmp.eq.f32.partialorder %v563_v35, 8.507059e+37 }
 0x139   :  { %v1017_v58 = vpop.eup %1016  ;;  %v1389_v59 = vadd.f32 1.0, %v1015_v57  ;;  %v381_v43 = vpop.xlane.xlu2 %380  ;;  %v566_v60 = vor.u32 1.1754944e-38, %v565_v40 }
 0x13a   :  { %v480_v62 = vmul.f32 %v1017_v58, %v463_v48  ;;  %vm485_vm2 = vweird.f32 %v1017_v58  ;;  %v402_v48 = vpop.xlane.xlu1 %401  ;;  %v942_v57 = vmul.f32 -1.442695, %v381_v43 }
 0x13b   :  { %1026 = vrcp.f32 %v1389_v59  ;;  %v1392_v0 = vpop.eup %1018  ;;  %vm1410_vm4 = vmor %vm484_vm1, %vm485_vm2  ;;  %v505_v42 = vand.u32 2147483648, %v1389_v59  ;;  %vm499_vm14 = vweird.f32 %v1389_v59  ;;  %v949_v63 = vmul.f32 -1.442695, %v402_v48 }
 0x13c   :  { %v481_v1 = vsub.f32 1.0, %v480_v62  ;;  %v1394_v3 = vpop.eup %1020  ;;  %v510_v7 = vmul.f32 %v1392_v0, %v465_v54  ;;  %1028 = vpow2.f32 %v944_v2  ;;  %vm515_vm6 = vweird.f32 %v1392_v0 }
 0x13d   :  { %v1023_v8 = vpop.eup %1022  ;;  %v555_v10 = vmul.f32 %v1394_v3, %v1386_v56  ;;  %vm560_vm7 = vweird.f32 %v1394_v3  ;;  %vm1434_vm10 = vmor %vm514_vm5, %vm515_vm6  ;;  %v503_v54 = vand.u32 2147483647, %v1389_v59  ;;  %v506_v62 = vor.u32 1.1754944e-38, %v505_v42 }
 0x13e   :  { %v482_v9 = vmul.f32 %v1017_v58, %v481_v1  ;;  %v1025_v11 = vpop.eup %1024  ;;  %v511_v50 = vsub.f32 1.0, %v510_v7  ;;  %v1403_v14 = vadd.f32 1.0, %v1023_v8  ;;  %vm1440_vm12 = vmor %vm559_vm8, %vm560_vm7 }
 0x13f   :  { %v556_v15 = vsub.f32 1.0, %v555_v10  ;;  %v1405_v19 = vadd.f32 1.0, %v1025_v11  ;;  %vm504_vm1 = vcmp.eq.f32.partialorder %v503_v54, 8.507059e+37 }
 0x140   :  { %v483_v38 = vadd.f32 %v1017_v58, %v482_v9  ;;  %v512_v26 = vmul.f32 %v1392_v0, %v511_v50  ;;  %1030 = vrcp.f32 %v1403_v14 }
 0x141   :  { %v1027_v22 = vpop.eup %1026  ;;  %v557_v30 = vmul.f32 %v1394_v3, %v556_v15  ;;  %1032 = vrcp.f32 %v1405_v19  ;;  %v610_v15 = vand.u32 2147483648, %v1403_v14  ;;  %vm679_vm7 = vweird.f32 %v1405_v19 }
 0x142   :  { %v495_v32 = vmul.f32 %v1027_v22, %v1389_v59  ;;  %v487_v34 = vsel %vm1410_vm4, %v1017_v58, %v483_v38  ;;  %v513_v36 = vadd.f32 %v1392_v0, %v512_v26  ;;  %v1029_v44 = vpop.eup %1028  ;;  %vm500_vm11 = vweird.f32 %v1027_v22 }
 0x143   :  { %v558_v29 = vadd.f32 %v1394_v3, %v557_v30  ;;  %v492_v45 = vsel %vm1399_vm3, %v491_v25, %v487_v34  ;;  %vm501_vm15 = vmor %vm499_vm14, %vm500_vm11  ;;  %v1462_v61 = vadd.f32 1.0, %v1029_v44  ;;  %1034 = vpow2.f32 %v942_v57 }
 0x144   :  { %v496_v37 = vsub.f32 1.0, %v495_v32  ;;  %v517_v53 = vsel %vm1434_vm10, %v1392_v0, %v513_v36  ;;  %v721_v58 = vmul.f32 %v492_v45, %v1272_v4  ;;  %1036 = vpow2.f32 %v949_v63  ;;  %v405_v36 = vpop.xlane.xlu0 %404 }
 0x145   :  { %v562_v55 = vsel %vm1440_vm12, %v1394_v3, %v558_v29  ;;  %v522_v0 = vsel %vm1426_vm9, %v521_v47, %v517_v53  ;;  %1038 = vrcp.f32 %v1462_v61  ;;  %vm604_vm3 = vweird.f32 %v1403_v14 }
 0x146   :  { %v497_v39 = vmul.f32 %v1027_v22, %v496_v37  ;;  %v1031_v49 = vpop.eup %1030  ;;  %v567_v3 = vsel %vm1444_vm13, %v566_v60, %v562_v55  ;;  %v723_v9 = vmul.f32 %v522_v0, %v1292_v16  ;;  %v737_v10 = vsel %vm91_vm0, %v721_v58, 0.0 }
 0x147   :  { %v600_v33 = vmul.f32 %v1031_v49, %v1403_v14  ;;  %v1458_v1 = vpop.eup %1032  ;;  %v726_v11 = vmul.f32 %v567_v3, %v1274_v5  ;;  %vm605_vm2 = vweird.f32 %v1031_v49  ;;  %v608_v16 = vand.u32 2147483647, %v1403_v14 }
 0x148   :  { %v498_v56 = vadd.f32 %v1027_v22, %v497_v39  ;;  %v675_v4 = vmul.f32 %v1458_v1, %v1405_v19  ;;  %v738_v26 = vrot.slane %v737_v10, 4  ;;  %vm606_vm4 = vmor %vm604_vm3, %vm605_vm2  ;;  %v611_v34 = vor.u32 1.1754944e-38, %v610_v15 }
 0x149   :  { %v601_v2 = vsub.f32 1.0, %v600_v33  ;;  %v1035_v25 = vpop.eup %1034  ;;  %v772_v5 = vsel %vm91_vm0, %v726_v11, 0.0  ;;  %vm609_vm5 = vcmp.eq.f32.partialorder %v608_v16, 8.507059e+37  ;;  %vm680_vm6 = vweird.f32 %v1458_v1 }
 0x14a   :  { %v502_v59 = vsel %vm501_vm15, %v1027_v22, %v498_v56  ;;  %v676_v38 = vsub.f32 1.0, %v675_v4  ;;  %v751_v22 = vsel %vm91_vm0, %v723_v9, 0.0  ;;  %v1037_v27 = vpop.eup %1036  ;;  %v1482_v35 = vadd.f32 1.0, %v1035_v25  ;;  %vm681_vm8 = vmor %vm679_vm7, %vm680_vm6 }
 0x14b   :  { %v507_v7 = vsel %vm504_vm1, %v506_v62, %v502_v59  ;;  %v602_v8 = vmul.f32 %v1031_v49, %v601_v2  ;;  %v1480_v31 = vpop.eup %1038  ;;  %v752_v32 = vrot.slane %v751_v22, 4  ;;  %v773_v14 = vrot.slane %v772_v5, 4  ;;  %v399_v62 = vpop.xlane.xlu2 %398 }
 0x14c   :  { %v722_v13 = vmul.f32 %v507_v7, %v1285_v12  ;;  %v677_v30 = vmul.f32 %v1458_v1, %v676_v38  ;;  %v570_v40 = vmul.f32 %v1480_v31, %v1462_v61  ;;  %v739_v41 = vadd.f32 %v738_v26, %v737_v10  ;;  %v378_v4 = vpop.xlane.xlu0 %377 }
 0x14d   :  { %v603_v50 = vadd.f32 %v1031_v49, %v602_v8  ;;  %v1488_v43 = vadd.f32 1.0, %v1037_v27  ;;  %v753_v44 = vadd.f32 %v752_v32, %v751_v22  ;;  %v685_v45 = vand.u32 2147483648, %v1405_v19 }
 0x14e   :  { %v744_v28 = vsel %vm91_vm0, %v722_v13, 0.0  ;;  %v678_v42 = vadd.f32 %v1458_v1, %v677_v30  ;;  %v571_v46 = vsub.f32 1.0, %v570_v40  ;;  %v950_v47 = vmul.f32 -1.442695, %v405_v36 }
 0x14f   :  { %v607_v12 = vsel %vm606_vm4, %v1031_v49, %v603_v50  ;;  %v745_v29 = vrot.slane %v744_v28, 4  ;;  %v683_v48 = vand.u32 2147483647, %v1405_v19  ;;  %1040 = vrcp.f32 %v1482_v35  ;;  %v396_v49 = vpop.xlane.xlu1 %395 }
 0x150   :  { %v612_v37 = vsel %vm609_vm5, %v611_v34, %v607_v12  ;;  %v774_v51 = vadd.f32 %v773_v14, %v772_v5  ;;  %v740_v53 = vrot.slane %v739_v41, 2  ;;  %v682_v54 = vsel %vm681_vm8, %v1458_v1, %v678_v42 }
 0x151   :  { %v729_v39 = vmul.f32 %v612_v37, %v1294_v17  ;;  %v746_v52 = vadd.f32 %v745_v29, %v744_v28  ;;  %v572_v55 = vmul.f32 %v1480_v31, %v571_v46  ;;  %1042 = vrcp.f32 %v1488_v43 }
 0x152   :  { %v754_v56 = vrot.slane %v753_v44, 2  ;;  %v686_v33 = vor.u32 1.1754944e-38, %v685_v45  ;;  %1044 = vpow2.f32 %v950_v47  ;;  %v947_v17 = vmul.f32 -1.442695, %v396_v49 }
 0x153   :  { %v793_v57 = vsel %vm91_vm0, %v729_v39, 0.0  ;;  %vm684_vm9 = vcmp.eq.f32.partialorder %v683_v48, 8.507059e+37  ;;  %v775_v19 = vrot.slane %v774_v51, 2  ;;  %v747_v58 = vrot.slane %v746_v52, 2 }
 0x154   :  { %v687_v60 = vsel %vm684_vm9, %v686_v33, %v682_v54  ;;  %v573_v0 = vadd.f32 %v1480_v31, %v572_v55  ;;  %vm575_vm10 = vweird.f32 %v1480_v31  ;;  %1046 = vpow2.f32 %v947_v17 }
 0x155   :  { %v1499_v63 = vpop.eup %1040  ;;  %v741_v1 = vadd.f32 %v740_v53, %v739_v41  ;;  %v755_v59 = vadd.f32 %v754_v56, %v753_v44  ;;  %v794_v2 = vrot.slane %v793_v57, 4  ;;  %v580_v3 = vand.u32 2147483648, %v1462_v61 }
 0x156   :  { %v734_v8 = vmul.f32 %v687_v60, %v1296_v18  ;;  %vm574_vm11 = vweird.f32 %v1462_v61  ;;  %v578_v9 = vand.u32 2147483647, %v1462_v61  ;;  %v948_v10 = vmul.f32 -1.442695, %v399_v62 }
 0x157   :  { %v1504_v7 = vpop.eup %1042  ;;  %v776_v13 = vadd.f32 %v775_v19, %v774_v51  ;;  %v748_v50 = vadd.f32 %v747_v58, %v746_v52  ;;  %vm1511_vm12 = vmor %vm574_vm11, %vm575_vm10  ;;  %v540_v15 = vmul.f32 %v1499_v63, %v1482_v35  ;;  %v941_v61 = vmul.f32 -1.442695, %v378_v4  ;;  %v411_v30 = vpop.xlane.xlu1 %410 }
 0x158   :  { %v1045_v11 = vpop.eup %1044  ;;  %v577_v18 = vsel %vm1511_vm12, %v1480_v31, %v573_v0  ;;  %1048 = vpow2.f32 %v948_v10  ;;  %v742_v16 = vrot.slane %v741_v1, 1  ;;  %v795_v25 = vadd.f32 %v794_v2, %v793_v57 }
 0x159   :  { %v1520_v22 = vadd.f32 1.0, %v1045_v11  ;;  %v581_v26 = vor.u32 1.1754944e-38, %v580_v3  ;;  %v756_v5 = vrot.slane %v755_v59, 1  ;;  %v828_v28 = vsel %vm91_vm0, %v734_v8, 0.0 }
 0x15a   :  { %v1047_v27 = vpop.eup %1046  ;;  %vm579_vm13 = vcmp.eq.f32.partialorder %v578_v9, 8.507059e+37  ;;  %v645_v12 = vmul.f32 %v1504_v7, %v1488_v43  ;;  %v541_v34 = vsub.f32 1.0, %v540_v15  ;;  %v777_v36 = vrot.slane %v776_v13, 1 }
 0x15b   :  { %v582_v32 = vsel %vm579_vm13, %v581_v26, %v577_v18  ;;  %1050 = vrcp.f32 %v1520_v22  ;;  %v1526_v31 = vadd.f32 1.0, %v1047_v27  ;;  %v749_v14 = vrot.slane %v748_v50, 1 }
 0x15c   :  { %1052 = vpow2.f32 %v941_v61  ;;  %v796_v29 = vrot.slane %v795_v25, 2  ;;  %v829_v37 = vrot.slane %v828_v28, 4  ;;  %v952_v40 = vmul.f32 -1.442695, %v411_v30 }
 0x15d   :  { %1054 = vrcp.f32 %v1526_v31  ;;  %vm865_vm14 = vcmask 1041409   ;;  %v727_v42 = vmul.f32 %v582_v32, %v1276_v6  ;;  %v646_v44 = vsub.f32 1.0, %v645_v12 }
 0x15e   :  { %v1049_v41 = vpop.eup %1048  ;;  %v743_v45 = vadd.f32 %v742_v16, %v741_v1  ;;  %v1530_v46 = vadd.f32 %v756_v5, %v755_v59  ;;  %v655_v47 = vand.u32 2147483648, %v1488_v43  ;;  %v542_v39 = vmul.f32 %v1499_v63, %v541_v34  ;;  %v390_v59 = vpop.xlane.xlu2 %389 }
 0x15f   :  { %v1534_v48 = vadd.f32 %v777_v36, %v776_v13  ;;  %v750_v49 = vadd.f32 %v749_v14, %v748_v50  ;;  %v653_v51 = vand.u32 2147483647, %v1488_v43  ;;  %v1537_v52 = vadd.f32 1.0, %v1049_v41 }
 0x160   :  { %v1541_v54 = vadd.f32 %v796_v29, %v795_v25  ;;  %v1543_v6 = vadd.f32 %v829_v37, %v828_v28  ;;  %v548_v55 = vand.u32 2147483647, %v1482_v35  ;;  %1056 = vpow2.f32 %v952_v40 }
 0x161   :  { %v1539_v53 = vpop.eup %1050  ;;  %v779_v33 = vsel %vm91_vm0, %v727_v42, 0.0  ;;  %v647_v17 = vmul.f32 %v1504_v7, %v646_v44  ;;  %vm649_vm15 = vweird.f32 %v1488_v43  ;;  %1058 = vrcp.f32 %v1537_v52  ;;  %v414_v44 = vpop.xlane.xlu0 %413 }
 0x162   :  { %v1053_v56 = vpop.eup %1052  ;;  %v656_v19 = vor.u32 1.1754944e-38, %v655_v47  ;;  %v543_v58 = vadd.f32 %v1499_v63, %v542_v39  ;;  %vm545_vm1 = vweird.f32 %v1499_v63  ;;  %v550_v60 = vand.u32 2147483648, %v1482_v35 }
 0x163   :  { %v1055_v57 = vpop.eup %1054  ;;  %v1554_v62 = vsel %vm865_vm14, %v750_v49, %v743_v45  ;;  %vm544_vm2 = vweird.f32 %v1482_v35  ;;  %v660_v0 = vmul.f32 %v1539_v53, %v1520_v22  ;;  %v798_v2 = vrot.slane %v1541_v54, 1 }
 0x164   :  { %v615_v1 = vmul.f32 %v1055_v57, %v1526_v31  ;;  %v831_v3 = vrot.slane %v1543_v6, 2  ;;  %v780_v4 = vrot.slane %v779_v33, 4  ;;  %vm1562_vm3 = vcmp.eq.f32.partialorder %v653_v51, 8.507059e+37  ;;  %vm1572_vm6 = vmor %vm544_vm2, %vm545_vm1 }
 0x165   :  { %vm1566_vm4 = vcmp.eq.f32.partialorder %v548_v55, 8.507059e+37  ;;  %v648_v35 = vadd.f32 %v1504_v7, %v647_v17  ;;  %vm650_vm5 = vweird.f32 %v1504_v7  ;;  %v1576_v13 = vadd.f32 1.0, %v1053_v56 }
 0x166   :  { %v616_v11 = vsub.f32 1.0, %v615_v1  ;;  %v1057_v50 = vpop.eup %1056  ;;  %v547_v38 = vsel %vm1572_vm6, %v1499_v63, %v543_v58  ;;  %v551_v15 = vor.u32 1.1754944e-38, %v550_v60  ;;  %v625_v18 = vand.u32 2147483648, %v1526_v31  ;;  %vm1589_vm8 = vmor %vm649_vm15, %vm650_vm5 }
 0x167   :  { %v945_v61 = vmul.f32 -1.442695, %v390_v59  ;;  %v1059_v16 = vpop.eup %1058  ;;  %v661_v25 = vsub.f32 1.0, %v660_v0  ;;  %vm620_vm7 = vweird.f32 %v1055_v57  ;;  %1060 = vrcp.f32 %v1576_v13 }
 0x168   :  { %v617_v26 = vmul.f32 %v1055_v57, %v616_v11  ;;  %v1583_v27 = vadd.f32 %v780_v4, %v779_v33  ;;  %v668_v63 = vand.u32 2147483647, %v1520_v22  ;;  %v623_v28 = vand.u32 2147483647, %v1526_v31 }
 0x169   :  { %v630_v12 = vmul.f32 %v1059_v16, %v1537_v52  ;;  %v652_v30 = vsel %vm1589_vm8, %v1504_v7, %v648_v35  ;;  %vm664_vm9 = vweird.f32 %v1520_v22  ;;  %vm619_vm10 = vweird.f32 %v1526_v31 }
 0x16a   :  { %v618_v32 = vadd.f32 %v1055_v57, %v617_v26  ;;  %v1601_v43 = vadd.f32 1.0, %v1057_v50  ;;  %v552_v34 = vsel %vm1566_vm4, %v551_v15, %v547_v38  ;;  %vm1605_vm11 = vmor %vm619_vm10, %vm620_vm7  ;;  %v626_v14 = vor.u32 1.1754944e-38, %v625_v18  ;;  %v1072_v18 = vld [vmem:[#allocation3 + $0x58] sm:$0xff] }
 0x16b   :  { %v631_v29 = vsub.f32 1.0, %v630_v12  ;;  %1062 = vpow2.f32 %v945_v61  ;;  %v662_v37 = vmul.f32 %v1539_v53, %v661_v25  ;;  %v638_v40 = vand.u32 2147483647, %v1537_v52 }
 0x16c   :  { %v622_v7 = vsel %vm1605_vm11, %v1055_v57, %v618_v32  ;;  %v640_v31 = vand.u32 2147483648, %v1537_v52  ;;  %v670_v41 = vand.u32 2147483648, %v1520_v22  ;;  %vm624_vm12 = vcmp.eq.f32.partialorder %v623_v28, 8.507059e+37 }
 0x16d   :  { %v632_v42 = vmul.f32 %v1059_v16, %v631_v29  ;;  %vm635_vm13 = vweird.f32 %v1059_v16  ;;  %v1061_v45 = vpop.eup %1060  ;;  %v657_v47 = vsel %vm1562_vm3, %v656_v19, %v652_v30  ;;  %v725_v39 = vmul.f32 %v552_v34, %v1314_v23 }
 0x16e   :  { %v627_v49 = vsel %vm624_vm12, %v626_v14, %v622_v7  ;;  %1064 = vrcp.f32 %v1601_v43  ;;  %vm665_vm15 = vweird.f32 %v1539_v53  ;;  %vm634_vm1 = vweird.f32 %v1537_v52 }
 0x16f   :  { %v633_v51 = vadd.f32 %v1059_v16, %v632_v42  ;;  %v525_v55 = vmul.f32 %v1061_v45, %v1576_v13  ;;  %v663_v56 = vadd.f32 %v1539_v53, %v662_v37  ;;  %vm636_vm2 = vmor %vm634_vm1, %vm635_vm13  ;;  %vm639_vm4 = vcmp.eq.f32.partialorder %v638_v40, 8.507059e+37  ;;  %v1073_v37 = vld [vmem:[#allocation3 + $0x60] sm:$0xff] }
 0x170   :  { %v641_v33 = vor.u32 1.1754944e-38, %v640_v31  ;;  %v953_v17 = vmul.f32 -1.442695, %v414_v44  ;;  %v730_v19 = vmul.f32 %v627_v49, %v1307_v21  ;;  %vm1624_vm3 = vcmp.eq.f32.partialorder %v668_v63, 8.507059e+37  ;;  %vm1635_vm5 = vmor %vm664_vm9, %vm665_vm15 }
 0x171   :  { %v1063_v57 = vpop.eup %1062  ;;  %v637_v23 = vsel %vm636_vm2, %v1059_v16, %v633_v51  ;;  %v526_v58 = vsub.f32 1.0, %v525_v55  ;;  %v671_v0 = vor.u32 1.1754944e-38, %v670_v41  ;;  %v535_v52 = vand.u32 2147483648, %v1576_v13 }
 0x172   :  { %v642_v1 = vsel %vm639_vm4, %v641_v33, %v637_v23  ;;  %v1211_v59 = vmov 0.0   ;;  %v765_v4 = vsel %vm91_vm0, %v725_v39, 0.0  ;;  %vm530_vm6 = vweird.f32 %v1061_v45 }
 0x173   :  { %92 = vst.msk [vmem:[#allocation2] sm:$0xff] %vm91_vm0, %v1211_v59  ;;  %v527_v8 = vmul.f32 %v1061_v45, %v526_v58  ;;  %v533_v9 = vand.u32 2147483647, %v1576_v13  ;;  %v667_v10 = vsel %vm1635_vm5, %v1539_v53, %v663_v56  ;;  %vm867_vm7 = vcmask 1042434  }
 0x174   :  { %93 = vst.msk [vmem:[#allocation2 + $0x8] sm:$0xff] %vm91_vm0, %v1211_v59  ;;  %v1065_v35 = vpop.eup %1064  ;;  %v731_v11 = vmul.f32 %v642_v1, %v1316_v24  ;;  %v1645_v50 = vadd.f32 1.0, %v1063_v57  ;;  %1066 = vpow2.f32 %v953_v17  ;;  %v800_v22 = vsel %vm91_vm0, %v730_v19, 0.0  ;;  %v1074_v57 = vld [vmem:[#allocation3 + $0x70] sm:$0xff] }
 0x175   :  { %v528_v38 = vadd.f32 %v1061_v45, %v527_v8  ;;  %vm529_vm8 = vweird.f32 %v1576_v13  ;;  %v690_v15 = vmul.f32 %v1065_v35, %v1601_v43  ;;  %v732_v61 = vmul.f32 %v1072_v18, %v657_v47 }
 0x176   :  { %v766_v16 = vrot.slane %v765_v4, 4  ;;  %vm531_vm9 = vmor %vm529_vm8, %vm530_vm6  ;;  %v536_v25 = vor.u32 1.1754944e-38, %v535_v52  ;;  %1068 = vrcp.f32 %v1645_v50  ;;  %v672_v24 = vsel %vm1624_vm3, %v671_v0, %v667_v10 }
 0x177   :  { %v532_v53 = vsel %vm531_vm9, %v1061_v45, %v528_v38  ;;  %vm534_vm10 = vcmp.eq.f32.partialorder %v533_v9, 8.507059e+37  ;;  %v691_v26 = vsub.f32 1.0, %v690_v15  ;;  %v801_v5 = vrot.slane %v800_v22, 4 }
 0x178   :  { %v807_v63 = vsel %vm91_vm0, %v731_v11, 0.0  ;;  %v537_v13 = vsel %vm534_vm10, %v536_v25, %v532_v53  ;;  %v700_v28 = vand.u32 2147483648, %v1601_v43  ;;  %vm695_vm11 = vweird.f32 %v1065_v35 }
 0x179   :  { %v724_v12 = vmul.f32 %v537_v13, %v1305_v20  ;;  %v692_v30 = vmul.f32 %v1065_v35, %v691_v26  ;;  %v698_v32 = vand.u32 2147483647, %v1601_v43  ;;  %v782_v36 = vrot.slane %v1583_v27, 2 }
 0x17a   :  { %v1067_v34 = vpop.eup %1066  ;;  %v814_v14 = vsel %vm91_vm0, %v732_v61, 0.0  ;;  %v767_v29 = vadd.f32 %v766_v16, %v765_v4  ;;  %v733_v7 = vmul.f32 %v1073_v37, %v672_v24  ;;  %v808_v40 = vrot.slane %v807_v63, 4 }
 0x17b   :  { %v758_v31 = vsel %vm91_vm0, %v724_v12, 0.0  ;;  %v693_v41 = vadd.f32 %v1065_v35, %v692_v30  ;;  %vm694_vm12 = vweird.f32 %v1601_v43  ;;  %v802_v20 = vadd.f32 %v801_v5, %v800_v22 }
 0x17c   :  { %v1069_v42 = vpop.eup %1068  ;;  %v759_v44 = vrot.slane %v758_v31, 4  ;;  %vm696_vm13 = vmor %vm694_vm12, %vm695_vm11  ;;  %v701_v45 = vor.u32 1.1754944e-38, %v700_v28  ;;  %v1663_v47 = vadd.f32 1.0, %v1067_v34  ;;  %v815_v39 = vrot.slane %v814_v14, 4 }
 0x17d   :  { %v697_v49 = vsel %vm696_vm13, %v1065_v35, %v693_v41  ;;  %vm699_vm15 = vcmp.eq.f32.partialorder %v698_v32, 8.507059e+37  ;;  %v585_v51 = vmul.f32 %v1069_v42, %v1645_v50  ;;  %v768_v55 = vrot.slane %v767_v29, 2 }
 0x17e   :  { %v760_v56 = vadd.f32 %v759_v44, %v758_v31  ;;  %v702_v33 = vsel %vm699_vm15, %v701_v45, %v697_v49  ;;  %1070 = vrcp.f32 %v1663_v47  ;;  %v809_v17 = vadd.f32 %v808_v40, %v807_v63  ;;  %v1075_v63 = vld [vmem:[#allocation3 + $0x38] sm:$0xff] }
 0x17f   :  { %v868_v43 = vsel %vm867_vm7, %v1530_v46, %v1554_v62  ;;  %v735_v19 = vmul.f32 %v1074_v57, %v702_v33  ;;  %v586_v23 = vsub.f32 1.0, %v585_v51  ;;  %v821_v58 = vsel %vm91_vm0, %v733_v7, 0.0 }
 0x180   :  { %v803_v60 = vrot.slane %v802_v20, 2  ;;  %v761_v0 = vrot.slane %v760_v56, 2  ;;  %v595_v1 = vand.u32 2147483648, %v1645_v50  ;;  %v1673_v52 = vadd.f32 %v782_v36, %v1583_v27 }
 0x181   :  { %v587_v59 = vmul.f32 %v1069_v42, %v586_v23  ;;  %vm590_vm1 = vweird.f32 %v1069_v42  ;;  %v593_v4 = vand.u32 2147483647, %v1645_v50  ;;  %v816_v21 = vadd.f32 %v815_v39, %v814_v14 }
 0x182   :  { %v769_v8 = vadd.f32 %v768_v55, %v767_v29  ;;  %v762_v9 = vadd.f32 %v761_v0, %v760_v56  ;;  %v835_v46 = vsel %vm91_vm0, %v735_v19, 0.0  ;;  %v822_v62 = vrot.slane %v821_v58, 4 }
 0x183   :  { %v810_v35 = vrot.slane %v809_v17, 2  ;;  %v588_v10 = vadd.f32 %v1069_v42, %v587_v59  ;;  %vm589_vm2 = vweird.f32 %v1645_v50  ;;  %v804_v22 = vadd.f32 %v803_v60, %v802_v20 }
 0x184   :  { %v1071_v11 = vpop.eup %1070  ;;  %vm869_vm4 = vcmask 1043459   ;;  %v763_v38 = vrot.slane %v762_v9, 1  ;;  %vm591_vm3 = vmor %vm589_vm2, %vm590_vm1  ;;  %v596_v27 = vor.u32 1.1754944e-38, %v595_v1  ;;  %v836_v15 = vrot.slane %v835_v46, 4 }
 0x185   :  { %v592_v18 = vsel %vm591_vm3, %v1069_v42, %v588_v10  ;;  %vm594_vm5 = vcmp.eq.f32.partialorder %v593_v4, 8.507059e+37  ;;  %v705_v61 = vmul.f32 %v1071_v11, %v1663_v47  ;;  %v817_v16 = vrot.slane %v816_v21, 2 }
 0x186   :  { %v770_v25 = vrot.slane %v769_v8, 1  ;;  %v764_v24 = vadd.f32 %v763_v38, %v762_v9  ;;  %v597_v53 = vsel %vm594_vm5, %v596_v27, %v592_v18  ;;  %v823_v26 = vadd.f32 %v822_v62, %v821_v58 }
 0x187   :  { %v811_v5 = vadd.f32 %v810_v35, %v809_v17  ;;  %v728_v13 = vmul.f32 %v1075_v63, %v597_v53  ;;  %v706_v50 = vsub.f32 1.0, %v705_v61  ;;  %v784_v28 = vrot.slane %v1673_v52, 1 }
 0x188   :  { %v805_v12 = vrot.slane %v804_v22, 1  ;;  %v713_v30 = vand.u32 2147483647, %v1663_v47  ;;  %v715_v32 = vand.u32 2147483648, %v1663_v47  ;;  %v837_v34 = vadd.f32 %v836_v15, %v835_v46 }
 0x189   :  { %v786_v36 = vsel %vm91_vm0, %v728_v13, 0.0  ;;  %v707_v14 = vmul.f32 %v1071_v11, %v706_v50  ;;  %vm710_vm6 = vweird.f32 %v1071_v11  ;;  %v818_v29 = vadd.f32 %v817_v16, %v816_v21 }
 0x18a   :  { %v771_v37 = vadd.f32 %v770_v25, %v769_v8  ;;  %v870_v7 = vsel %vm869_vm4, %v764_v24, %v868_v43  ;;  %v787_v40 = vrot.slane %v786_v36, 4  ;;  %v824_v31 = vrot.slane %v823_v26, 2  ;;  %v720_v24 = vld [vmem:[#allocation2 + $0x8] sm:$0xff] }
 0x18b   :  { %v812_v41 = vrot.slane %v811_v5, 1  ;;  %v708_v42 = vadd.f32 %v1071_v11, %v707_v14  ;;  %vm709_vm8 = vweird.f32 %v1663_v47  ;;  %v806_v20 = vadd.f32 %v805_v12, %v804_v22  ;;  %v1076_v47 = vld [vmem:[#allocation3 + $0x78] sm:$0xff] }
 0x18c   :  { %vm871_vm9 = vcmask 1044484   ;;  %v788_v44 = vadd.f32 %v787_v40, %v786_v36  ;;  %vm711_vm10 = vmor %vm709_vm8, %vm710_vm6  ;;  %v716_v45 = vor.u32 1.1754944e-38, %v715_v32  ;;  %v838_v49 = vrot.slane %v837_v34, 2 }
 0x18d   :  { %v872_v39 = vsel %vm871_vm9, %v771_v37, %v870_v7  ;;  %v712_v51 = vsel %vm711_vm10, %v1071_v11, %v708_v42  ;;  %vm714_vm11 = vcmp.eq.f32.partialorder %v713_v30, 8.507059e+37  ;;  %v799_v55 = vadd.f32 %v798_v2, %v1541_v54 }
 0x18e   :  { %v819_v56 = vrot.slane %v818_v29, 1  ;;  %v789_v33 = vrot.slane %v788_v44, 2  ;;  %v717_v17 = vsel %vm714_vm11, %v716_v45, %v712_v51  ;;  %v825_v43 = vadd.f32 %v824_v31, %v823_v26 }
 0x18f   :  { %v813_v57 = vadd.f32 %v812_v41, %v811_v5  ;;  %vm873_vm12 = vcmask 1045509   ;;  %v736_v19 = vmul.f32 %v1076_v47, %v717_v17  ;;  %v879_v23 = vsel %vm865_vm14, %v806_v20, %v799_v55 }
 0x190   :  { %vm875_vm13 = vcmask 1046534   ;;  %v874_v58 = vsel %vm873_vm12, %v1534_v48, %v872_v39  ;;  %v790_v60 = vadd.f32 %v789_v33, %v788_v44  ;;  %v785_v0 = vadd.f32 %v784_v28, %v1673_v52  ;;  %v719_v48 = vld [vmem:[#allocation2] sm:$0xff] }
 0x191   :  { %v839_v1 = vadd.f32 %v838_v49, %v837_v34  ;;  %v842_v54 = vsel %vm91_vm0, %v736_v19, 0.0  ;;  %v832_v2 = vadd.f32 %v831_v3, %v1543_v6  ;;  %v826_v21 = vrot.slane %v825_v43, 1 }
 0x192   :  { %v791_v59 = vrot.slane %v790_v60, 1  ;;  %v843_v4 = vrot.slane %v842_v54, 4  ;;  %v880_v8 = vsel %vm867_vm7, %v813_v57, %v879_v23  ;;  %v876_v9 = vsel %vm875_vm13, %v785_v0, %v874_v58 }
 0x193   :  { %vm877_vm14 = vcmask 1047559   ;;  %v820_v46 = vadd.f32 %v819_v56, %v818_v29  ;;  %v840_v52 = vrot.slane %v839_v1, 1  ;;  %v833_v10 = vrot.slane %v832_v2, 1 }
 0x194   :  { %v792_v62 = vadd.f32 %v791_v59, %v790_v60  ;;  %v844_v35 = vadd.f32 %v843_v4, %v842_v54  ;;  %v827_v6 = vadd.f32 %v826_v21, %v825_v43 }
 0x195   :  { %v881_v11 = vsel %vm869_vm4, %v820_v46, %v880_v8  ;;  %v841_v15 = vadd.f32 %v840_v52, %v839_v1  ;;  %v834_v61 = vadd.f32 %v833_v10, %v832_v2 }
 0x196   :  { %v878_v22 = vsel %vm877_vm14, %v792_v62, %v876_v9  ;;  %v845_v38 = vrot.slane %v844_v35, 2  ;;  %v882_v18 = vsel %vm871_vm9, %v827_v6, %v881_v11 }
 0x197   :  { %v888_v3 = vadd.f32 %v878_v22, %v719_v48  ;;  %v883_v25 = vsel %vm873_vm12, %v834_v61, %v882_v18 }
 0x198   :  { %v846_v27 = vadd.f32 %v845_v38, %v844_v35  ;;  %v884_v26 = vsel %vm875_vm13, %v841_v15, %v883_v25 }
 0x199   :  { %890 = vst.msk [vmem:[#allocation2] sm:$0xff] %vm91_vm0, %v888_v3 }
 0x19a   :  { %v847_v16 = vrot.slane %v846_v27, 1 }
 0x19c   :  { %v848_v53 = vadd.f32 %v847_v16, %v846_v27 }
 0x19e   :  { %v885_v5 = vsel %vm877_vm14, %v848_v53, %v884_v26 }
 0x19f   :  { %v889_v63 = vadd.f32 %v885_v5, %v720_v24 }
 0x1a0   :  { %v895_v13 = vld [vmem:[#allocation2] sm:$0xff] }
 0x1a1   :  { %891 = vst.msk [vmem:[#allocation2 + $0x8] sm:$0xff] %vm91_vm0, %v889_v63 }
 0x1a2   :  { %897 = vst.msk [vmem:[#allocation11] sm:$0xff] %vm91_vm0, %v895_v13 }
 0x1a8   :  { %v896_v50 = vld [vmem:[#allocation2 + $0x8] sm:$0xff] }
 0x1a9   :  { %898 = vst.msk [vmem:[#allocation11 + $0x8] sm:$0xff] %vm91_vm0, %v896_v50 }
 0x1aa   :  { %911 = dma.vmem_to_hbm [thread:$0]  %s904_s18, 256, %s906_s21, [#allocation5], %s1206_s29, %s1206_s29, %s1207_s30  }
 0x1ab   :  { %1203 = dma.done.wait [#allocation5], 256  }
 0x1ac   :  { %1204 = vsyncadd [#allocation5], 4294967040 }
 0x1ad   :  { %916 = vsyncpa [#allocation4], 1 }
 0x1ae   :  { %917 = vsyncpa [#allocation7], 1 }
 0x1af   :  { %918 = vsyncpa [#allocation10], 1 }
 0x1b0   :  { %919 = vsyncpa [#allocation5], 1 }

</bundles_post_ra>
